<compile_context>
chip_gen: v7x
topology: tpu7x:2x2x1
jax: 0.10.0
libtpu: 0.0.40
codegen_flags: <defaults>
</compile_context>

<pallas_src>
import functools
import math

import jax
import jax.numpy as jnp
from jax.experimental import pallas as pl
from jax.experimental.pallas import tpu as pltpu


_TARGET_BLOCK_BYTES = 8 * 1024 * 1024   # ~8 MiB output block per grid step
_VMEM_LIMIT_BYTES = 32 * 1024 * 1024    # 2 x 8 MiB double-buffered + headroom
                                        # (<= default scope on v6e/v7x, raises v5e)


# ---------------------------------------------------------------------------
# Kernels
# ---------------------------------------------------------------------------
def _pe_kernel(t_ref, fp_ref, o_ref, *, dim):
    """General path: one (TB, dim) output tile per grid step.

    t_ref:  (TB, 1)   f32 timesteps
    fp_ref: (2, dim)  f32 resident constants: row 0 = per-column frequency
                      (0 for the odd pad column), row 1 = per-column phase
                      (0 -> cos, pi/2 -> sin)
    o_ref:  (TB, dim) f32 output
    """
    freq = fp_ref[0:1, :]
    phase = fp_ref[1:2, :]
    # Single pass: emb[:, d] = cos(t * freq[d] - phase[d]).
    o_ref[...] = jnp.cos(t_ref[...] * freq - phase)
    if dim % 2:
        # Exact zero for the odd padding column (matches torch.zeros_like cat).
        o_ref[:, dim - 1:dim] = jnp.zeros((o_ref.shape[0], 1), dtype=o_ref.dtype)


def _pe_kernel_packed(t_ref, rep_ref, fp_ref, o_ref):
    """Lane-packed path (dim < 128, 128 % dim == 0): 128//dim timesteps per row.

    t_ref:  (TBR, P)   f32 timesteps, P = 128 // dim
    rep_ref:(P, 128)   f32 replication matrix, rep[p, l] = (l // dim == p)
    fp_ref: (2, 128)   f32 resident constants tiled P times
                       (row 0: freq_full[l % dim], row 1: phase_full[l % dim])
    o_ref:  (TBR, 128) f32 lane-dense packed output (row-major view of (B, dim))
    """
    # Replicate each timestep across its `dim` lanes on the (otherwise idle)
    # MXU so the VPU stream and the stores stay fully lane-dense.  HIGHEST
    # precision keeps the f32 timesteps exact (no single-pass bf16 truncation,
    # which matters on v7x's bf16/fp8-only MXU).
    t_rep = jnp.dot(t_ref[...], rep_ref[...],
                    preferred_element_type=jnp.float32,
                    precision=jax.lax.Precision.HIGHEST)
    o_ref[...] = jnp.cos(t_rep * fp_ref[0:1, :] - fp_ref[1:2, :])


# ---------------------------------------------------------------------------
# Host-side helpers
# ---------------------------------------------------------------------------
def _freq_phase(dim, max_period):
    """(2, dim) resident constant: row 0 frequencies, row 1 phases."""
    half = dim // 2
    k = jnp.arange(half, dtype=jnp.float32)
    base = jnp.exp(-math.log(max_period) * k / half)   # same expr as PyTorch ref
    freq = jnp.concatenate([base, base, jnp.zeros((dim % 2,), jnp.float32)])
    phase = jnp.concatenate(
        [jnp.zeros((half,), jnp.float32),
         jnp.full((half + dim % 2,), math.pi / 2, dtype=jnp.float32)])
    return jnp.stack([freq, phase])                    # (2, dim)


def _pick_rows(nrows, row_bytes):
    """Rows per output block.

    * ~_TARGET_BLOCK_BYTES per block (double-buffer-safe under the explicit
      32 MiB vmem limit on every generation).
    * At least 2 grid steps whenever the batch is big enough to split, so the
      "parallel" grid axis can shard across v7x's 2 TensorCores.
    * Multiple of 8 (sublane tiling) unless the block equals the full array.
    """
    cap = max(8, (_TARGET_BLOCK_BYTES // max(row_bytes, 1)) // 8 * 8)
    if nrows > 8:
        two_step = ((pl.cdiv(nrows, 2) + 7) // 8) * 8
        cap = min(cap, two_step)
    return nrows if nrows <= cap else cap


def _pe_general(t, dim, fp):
    b = t.shape[0]
    tb = _pick_rows(b, 4 * dim)
    cost = pl.CostEstimate(flops=2 * b * dim, transcendentals=b * dim,
                           bytes_accessed=4 * (b + 2 * dim + b * dim))
    return pl.pallas_call(
        functools.partial(_pe_kernel, dim=dim),
        out_shape=jax.ShapeDtypeStruct((b, dim), jnp.float32),
        grid=(pl.cdiv(b, tb),),
        in_specs=[
            pl.BlockSpec((tb, 1), lambda i: (i, 0)),
            pl.BlockSpec((2, dim), lambda i: (0, 0)),   # resident, not re-fetched
        ],
        out_specs=pl.BlockSpec((tb, dim), lambda i: (i, 0)),
        compiler_params=pltpu.CompilerParams(
            dimension_semantics=("parallel",),
            vmem_limit_bytes=_VMEM_LIMIT_BYTES),
        cost_estimate=cost,
    )(t.reshape(b, 1), fp)


def _pe_packed(t, dim, fp):
    """Lane-dense path; caller guarantees b % (128 // dim) == 0 (no pad/copy)."""
    b = t.shape[0]
    p = 128 // dim                                     # timesteps per 128-lane row
    rows = b // p
    rep = jnp.repeat(jnp.eye(p, dtype=jnp.float32), dim, axis=1)    # (p, 128)
    fp_p = jnp.tile(fp, (1, p))                                     # (2, 128)
    tbr = _pick_rows(rows, 4 * 128)
    cost = pl.CostEstimate(
        flops=2 * rows * p * 128 + 2 * rows * 128,
        transcendentals=rows * 128,
        bytes_accessed=4 * (rows * p + p * 128 + 2 * 128 + rows * 128))
    out = pl.pallas_call(
        _pe_kernel_packed,
        out_shape=jax.ShapeDtypeStruct((rows, 128), jnp.float32),
        grid=(pl.cdiv(rows, tbr),),
        in_specs=[
            pl.BlockSpec((tbr, p), lambda i: (i, 0)),
            pl.BlockSpec((p, 128), lambda i: (0, 0)),   # resident constants
            pl.BlockSpec((2, 128), lambda i: (0, 0)),
        ],
        out_specs=pl.BlockSpec((tbr, 128), lambda i: (i, 0)),
        compiler_params=pltpu.CompilerParams(
            dimension_semantics=("parallel",),
            vmem_limit_bytes=_VMEM_LIMIT_BYTES),
        cost_estimate=cost,
    )(t.reshape(rows, p), rep, fp_p)
    # (rows, 128) row-major IS (b, dim) row-major: this reshape is free.
    return out.reshape(b, dim)


def sinusoidal_positional_encoding(timesteps, dim, max_period=10000):
    """JAX/Pallas equivalent of SinusoidalPositionalEncoding(dim, max_period)."""
    if dim < 2:
        raise ValueError("dim must be >= 2 (dim=1 degenerates in the reference)")
    t = jnp.asarray(timesteps, dtype=jnp.float32).reshape(-1)
    fp = _freq_phase(dim, max_period)
    b = t.shape[0]
    if dim < 128 and 128 % dim == 0 and b % (128 // dim) == 0:
        out = _pe_packed(t, dim, fp)      # lane-dense stores, no pad/slice copy
    else:
        # TODO(synk): dims that don't divide 128 (e.g. 129) and batches not
        # aligned to 128//dim still take the general path (partially masked
        # stores); a resident lcm(dim,128)-period freq/phase table would make
        # those lane-dense too.
        out = _pe_general(t, dim, fp)
    # The PyTorch forward ends with .squeeze() (removes ALL size-1 dims).
    return jnp.squeeze(out)


# ---------------------------------------------------------------------------
# Pure-JAX reference + demo
# ---------------------------------------------------------------------------
def _reference(timesteps, dim, max_period=10000):
    half = dim // 2
    freqs = jnp.exp(
        -math.log(max_period) * jnp.arange(half, dtype=jnp.float32) / half)
    args = timesteps[:, None].astype(jnp.float32) * freqs[None]
    emb = jnp.concatenate([jnp.cos(args), jnp.sin(args)], axis=-1)
    if dim % 2:
        emb = jnp.concatenate([emb, jnp.zeros_like(emb[:, :1])], axis=-1)
    return jnp.squeeze(emb)


if __name__ == "__main__":
    key = jax.random.PRNGKey(0)
    batch = 8
    timesteps = jax.random.uniform(
        key, (batch,), dtype=jnp.float32, minval=0.0, maxval=1000.0)

    # Case 1: dim=32, batch aligned to 128//dim=4 -> lane-packed fast path.
    out = jax.block_until_ready(sinusoidal_positional_encoding(timesteps, 32))
    ref = _reference(timesteps, 32)
    assert out.shape == ref.shape, (out.shape, ref.shape)
    # sin(x) computed as cos(x - pi/2) differs from direct sin by ~1 f32 ulp of
    # the argument (args up to ~1e3 => ~3e-5), hence atol=1e-4.
    assert jnp.allclose(out, ref, atol=1e-4, rtol=1e-5), "packed path mismatch"

    # Case 2: odd dim >= 128 -> general path (explicit zero pad column).
    out = jax.block_until_ready(sinusoidal_positional_encoding(timesteps, 129))
    ref = _reference(timesteps, 129)
    assert out.shape == ref.shape, (out.shape, ref.shape)
    assert jnp.allclose(out, ref, atol=1e-4, rtol=1e-5), "general path mismatch"

    # Case 3: unaligned batch (10 % 4 != 0) -> general-path fallback, no copy.
    t10 = jax.random.uniform(jax.random.PRNGKey(1), (10,), dtype=jnp.float32,
                             minval=0.0, maxval=1000.0)
    out = jax.block_until_ready(sinusoidal_positional_encoding(t10, 32))
    ref = _reference(t10, 32)
    assert out.shape == ref.shape, (out.shape, ref.shape)
    assert jnp.allclose(out, ref, atol=1e-4, rtol=1e-5), "fallback path mismatch"

    # Case 4: batch=48, dim=64 -> packed path with a 2-step "parallel" grid
    # (exercises the >=2-step megacore cap and a partial tail block).
    t48 = jax.random.uniform(jax.random.PRNGKey(2), (48,), dtype=jnp.float32,
                             minval=0.0, maxval=1000.0)
    out = jax.block_until_ready(sinusoidal_positional_encoding(t48, 64))
    ref = _reference(t48, 64)
    assert out.shape == ref.shape, (out.shape, ref.shape)
    assert jnp.allclose(out, ref, atol=1e-4, rtol=1e-5), "multi-step grid mismatch"

    print("KERNEL_OK")
</pallas_src>

<mosaic_0001>
module attributes {stable_mosaic.version = 11 : i64} {
  func.func @_pe_kernel_packed(%arg0: i32, %arg1: memref<2x4xf32, #tpu.memory_space<vmem>>, %arg2: memref<4x128xf32, #tpu.memory_space<vmem>>, %arg3: memref<2x128xf32, #tpu.memory_space<vmem>>, %arg4: memref<2x128xf32, #tpu.memory_space<vmem>>) attributes {dimension_semantics = [#tpu.dimension_semantics<parallel>], iteration_bounds = array<i64: 1>, scalar_prefetch = 0 : i64, scratch_operands = 0 : i64, tpu.core_type = #tpu.core_type<tc>, window_params = [{transform_indices = @transform_0, window_bounds = array<i64: 2, 4>}, {pipeline_mode = #tpu.pipeline_mode<synchronous>, transform_indices = @transform_1, window_bounds = array<i64: 4, 128>}, {pipeline_mode = #tpu.pipeline_mode<synchronous>, transform_indices = @transform_2, window_bounds = array<i64: 2, 128>}, {transform_indices = @transform_3, window_bounds = array<i64: 2, 128>}]} {
    %c0 = arith.constant 0 : index
    %c0_0 = arith.constant 0 : index
    %0 = vector.load %arg1[%c0, %c0_0] : memref<2x4xf32, #tpu.memory_space<vmem>>, vector<2x4xf32>
    %c0_1 = arith.constant 0 : index
    %c0_2 = arith.constant 0 : index
    %1 = vector.load %arg2[%c0_1, %c0_2] : memref<4x128xf32, #tpu.memory_space<vmem>>, vector<4x128xf32>
    %cst = arith.constant dense<0.000000e+00> : vector<2x128xf32>
    %2 = tpu.matmul %0, %1, %cst {dimension_numbers = #tpu.dot_dimension_numbers<[1], [0], [0], [1], [0, 0, 1, 1], [], []>, precision = #tpu.contract_precision<fp32>} : vector<2x4xf32>, vector<4x128xf32>, vector<2x128xf32> -> vector<2x128xf32>
    %c0_3 = arith.constant 0 : index
    %c0_4 = arith.constant 0 : index
    %3 = vector.load %arg3[%c0_3, %c0_4] : memref<2x128xf32, #tpu.memory_space<vmem>>, vector<1x128xf32>
    %4 = vector.broadcast %3 : vector<1x128xf32> to vector<2x128xf32>
    %5 = arith.mulf %2, %4 : vector<2x128xf32>
    %c1 = arith.constant 1 : index
    %c0_5 = arith.constant 0 : index
    %6 = vector.load %arg3[%c1, %c0_5] : memref<2x128xf32, #tpu.memory_space<vmem>>, vector<1x128xf32>
    %7 = vector.broadcast %6 : vector<1x128xf32> to vector<2x128xf32>
    %8 = arith.subf %5, %7 : vector<2x128xf32>
    %9 = math.cos %8 : vector<2x128xf32>
    %c0_6 = arith.constant 0 : index
    %c0_7 = arith.constant 0 : index
    %10 = vector.load %arg4[%c0_6, %c0_7] : memref<2x128xf32, #tpu.memory_space<vmem>>, vector<2x128xf32>
    tpu.vector_store %arg4[%c0_6, %c0_7], %9 {strides = array<i32>} : memref<2x128xf32, #tpu.memory_space<vmem>>, vector<2x128xf32>,
    return
  }
  func.func @transform_0(%arg0: i32) -> (i32, i32) {
    %c0_i32 = arith.constant 0 : i32
    %c0_i32_0 = arith.constant 0 : i32
    return %arg0, %c0_i32 : i32, i32
  }
  func.func @transform_1(%arg0: i32) -> (i32, i32) {
    %c0_i32 = arith.constant 0 : i32
    %c0_i32_0 = arith.constant 0 : i32
    %c0_i32_1 = arith.constant 0 : i32
    return %c0_i32, %c0_i32_0 : i32, i32
  }
  func.func @transform_2(%arg0: i32) -> (i32, i32) {
    %c0_i32 = arith.constant 0 : i32
    %c0_i32_0 = arith.constant 0 : i32
    %c0_i32_1 = arith.constant 0 : i32
    return %c0_i32, %c0_i32_0 : i32, i32
  }
  func.func @transform_3(%arg0: i32) -> (i32, i32) {
    %c0_i32 = arith.constant 0 : i32
    %c0_i32_0 = arith.constant 0 : i32
    return %arg0, %c0_i32 : i32, i32
  }
}

</mosaic_0001>

<bundles_post_ra>
// kernel: tpu_custom_call.1
= control target key start
LH: loop header
LB: loop body
LE: loop exit
PB: predicated region body
PF: predicated region fallthrough
CT: control target
= control target key end

     0   :  { %8 = vsyncpa [#allocation3], 0  ;;  %s875_s0 = inlined_call_operand.hbm [shape: f32[2,4], index: 0, kind: input, shape index: {}]   ;;  %s876_s1 = inlined_call_operand.hbm [shape: f32[4,128], index: 1, kind: input, shape index: {}]   ;;  %s877_s2 = inlined_call_operand.vmem [shape: f32[2,128], index: 2, kind: input, shape index: {}]   ;;  %s878_s3 = inlined_call_operand.hbm [shape: f32[2,128], index: 3, kind: output, shape index: {}]  }
   0x1   :  { %9 = vsyncpa [#allocation6], 0 }
   0x2   :  { %10 = vsyncpa [#allocation4], 0  ;;  %s775_s12 = smov [#allocation2]   ;;  %s776_s14 = smov [#allocation5]  }
   0x3   :  { %s17_s13 = sshll.u32 %s775_s12, 4  ;;  %s27_s15 = sshll.u32 %s776_s14, 4  ;;  %s18_s13 = int_to_ptr.vmem [resolvable:$true] %s17_s13  ;;  %s28_s15 = int_to_ptr.vmem [resolvable:$true] %s27_s15 }
   0x4   :  { %s703_s18 = scalar_lea.hbm %s875_s0, 32 }
   0x5   :  { %p704_p0 = scmp.ne.s32.totalorder %s875_s0, %s703_s18  ;;  %p707_p1 = scmp.lt.u32.totalorder %s703_s18, %s875_s0 }
   0x7   :  { %p709_p2 = pnand %p707_p1, %p704_p0 }
   0x9   :  { %712 = shalt.err (!%p709_p2)
}
   0xa   :  { %s713_s23 = scalar_lea.vmem %s18_s13, 32  ;;  %p718_p4 = scmp.lt.s32.totalorder %s18_s13, %s18_s13 }
   0xb   :  { %p714_p3 = scmp.ne.s32.totalorder %s18_s13, %s713_s23  ;;  %p719_p5 = scmp.lt.s32.totalorder %s713_s23, %s713_s23 }
   0xd   :  { %p720_p6 = por %p719_p5, %p718_p4 }
   0xf   :  { %p721_p7 = pnand %p720_p6, %p714_p3 }
  0x11   :  { %724 = shalt.err (!%p721_p7)
}
  0x12   :  { %20 = dma.hbm_to_vmem [thread:$0]  %s875_s0, 32, %s18_s13, [#allocation3]  }
  0x13   :  { %s725_s28 = scalar_lea.hbm %s876_s1, 64 }
  0x14   :  { %p726_p8 = scmp.ne.s32.totalorder %s876_s1, %s725_s28  ;;  %p729_p9 = scmp.lt.u32.totalorder %s725_s28, %s876_s1 }
  0x16   :  { %p731_p10 = pnand %p729_p9, %p726_p8 }
  0x18   :  { %734 = shalt.err (!%p731_p10)
}
  0x19   :  { %s735_s6 = scalar_lea.vmem %s28_s15, 64  ;;  %p740_p12 = scmp.lt.s32.totalorder %s28_s15, %s28_s15 }
  0x1a   :  { %p736_p11 = scmp.ne.s32.totalorder %s28_s15, %s735_s6  ;;  %p741_p13 = scmp.lt.s32.totalorder %s735_s6, %s735_s6 }
  0x1c   :  { %p742_p0 = por %p741_p13, %p740_p12 }
  0x1e   :  { %p743_p1 = pnand %p742_p0, %p736_p11 }
  0x20   :  { %746 = shalt.err (!%p743_p1)
}
  0x21   :  { %30 = dma.hbm_to_vmem [thread:$0]  %s876_s1, 64, %s28_s15, [#allocation6]  }
  0x22   :  { %769 = dma.done.wait [#allocation3], 32  }
  0x23   :  { %770 = vsyncadd [#allocation3], 4294967264 }
  0x24   :  { %771 = dma.done.wait [#allocation6], 64  }
  0x25   :  { %772 = vsyncadd [#allocation6], 4294967232  ;;  %v777_v0 = vmov 0.0   ;;  %vm778_vm0 = vmmov 0   ;;  %vm45_vm1 = vcmask 1043456   ;;  %vm41_vm2 = vcmask 31744  }
  0x26   :  { %660 = vmatprep.subr.mxu0 %v777_v0  ;;  %662 = vmatprep.mubr.msk.f32.mxu0 %vm778_vm0, %v777_v0  ;;  %v40_v1 = vld [vmem:[#allocation5] sm:$0xf]  ;;  %v39_v2 = vld [vmem:[#allocation2] sm:$0x3]  ;;  %v779_v34 = vmov 683565275  }
  0x27   :  { %645 = vmatprep.subr.mxu1 %v777_v0  ;;  %647 = vmatprep.mubr.msk.f32.mxu1 %vm778_vm0, %v777_v0  ;;  %v47_v3 = vsel %vm45_vm1, %v40_v1, 0  ;;  %v43_v4 = vsel %vm41_vm2, %v39_v2, 0  ;;  %v627_v18 = vld [vmem:[%s877_s2] ss:$0 sm:$0xff]  ;;  %v628_v21 = vld [vmem:[%s877_s2 + $0x1] ss:$0 sm:$0xff] }
  0x28   :  { %v50_v5 = vand.u32 4294901760, %v47_v3  ;;  %v115_v6 = vand.u32 4294901760, %v43_v4  ;;  %v780_v36 = vmov 2475754826   ;;  %v781_v39 = vmov 2131351028  }
  0x29   :  { %v782_v42 = vmov 2102212464   ;;  %v783_v45 = vmov 920167782   ;;  %v784_v48 = vmov 1326507024  }
  0x2a   :  { %v127_v7 = vsub.f32 %v47_v3, %v50_v5  ;;  %661 = vmatpush3.msra.mxu0 %v50_v5  ;;  %v116_v8 = vsub.f32 %v43_v4, %v115_v6  ;;  %646 = vmatpush3.msra.mxu1 %v50_v5  ;;  %s785_s2 = smov [#allocation7]  }
  0x2b   :  { %650 = vmatprep.subr.mxu1 %v777_v0  ;;  %665 = vmatprep.subr.mxu0 %v777_v0  ;;  %s617_s11 = sshll.u32 %s785_s2, 4  ;;  %s618_s11 = int_to_ptr.vmem [resolvable:$true] %s617_s11 }
  0x2c   :  { %v117_v9 = vand.u32 4294901760, %v116_v8  ;;  %v128_v10 = vand.u32 4294901760, %v127_v7  ;;  %s747_s12 = scalar_lea.vmem %s618_s11, 32  ;;  %p752_p3 = scmp.lt.s32.totalorder %s618_s11, %s618_s11 }
  0x2d   :  { %p748_p2 = scmp.ne.s32.totalorder %s618_s11, %s747_s12  ;;  %p753_p4 = scmp.lt.s32.totalorder %s747_s12, %s747_s12 }
  0x2e   :  { %663 = vmatmul.mubr.f32.vlgmr.msra.gmra.mrb[0].mxu0 %v117_v9  ;;  %v118_v11 = vsub.f32 %v116_v8, %v117_v9  ;;  %v129_v12 = vsub.f32 %v127_v7, %v128_v10 }
  0x2f   :  { %666 = vmatpush3.msra.mxu0 %v128_v10  ;;  %667 = vmatprep.mubr.msk.f32.mxu0 %vm778_vm0, %v777_v0  ;;  %p754_p5 = por %p753_p4, %p752_p3 }
  0x30   :  { %v119_v13 = vand.u32 4294901760, %v118_v11  ;;  %v130_v14 = vand.u32 4294901760, %v129_v12  ;;  %670 = vmatprep.subr.mxu0 %v777_v0 }
  0x31   :  { %p755_p6 = pnand %p754_p5, %p748_p2 }
  0x32   :  { %648 = vmatmul.mubr.f32.vlgmr.msra.gmra.mrb[0].mxu1 %v119_v13 }
  0x33   :  { %651 = vmatpush3.msra.mxu1 %v130_v14  ;;  %652 = vmatprep.mubr.msk.f32.mxu1 %vm778_vm0, %v777_v0 }
  0x34   :  { %655 = vmatprep.subr.mxu1 %v777_v0 }
  0x36   :  { %668 = vmatmul.mubr.f32.vlgmr.msra.gmra.mrb[0].mxu0 %v115_v6 }
  0x37   :  { %671 = vmatpush3.msra.mxu0 %v50_v5  ;;  %672 = vmatprep.mubr.msk.f32.mxu0 %vm778_vm0, %v777_v0 }
  0x3a   :  { %653 = vmatmul.mubr.f32.vlgmr.msra.gmra.mrb[0].mxu1 %v115_v6 }
  0x3b   :  { %656 = vmatpush3.msra.mxu1 %v127_v7  ;;  %657 = vmatprep.mubr.msk.f32.mxu1 %vm778_vm0, %v777_v0 }
  0x3e   :  { %673 = vmatmul.mubr.f32.vlgmr.msra.gmra.mrb[0].mxu0 %v115_v6 }
  0x42   :  { %658 = vmatmul.mubr.f32.vlgmr.msra.gmra.mrb[0].mxu1 %v116_v8 }
 0x111   :  { %v491_v15 = vpop.f32.mrb[0].mxu0 }
 0x112   :  { %v674_v16 = vpop.f32.mrb[1].mxu0 }
 0x115   :  { %v271_v17 = vpop.f32.mrb[0].mxu1 }
 0x116   :  { %v675_v19 = vadd.f32 %v491_v15, %v271_v17  ;;  %v659_v20 = vpop.f32.mrb[1].mxu1 }
 0x118   :  { %v500_v22 = vmul.f32 %v675_v19, %v627_v18 }
 0x11a   :  { %v842_v23 = vsub.f32 %v500_v22, %v628_v21 }
 0x11c   :  { %v510_v24 = vand.u32 2139095040, %v842_v23  ;;  %v507_v28 = vand.u32 2147483647, %v842_v23  ;;  %vm509_vm10 = vcmp.lt.s32.totalorder %v842_v23, 0  ;;  %vm599_vm15 = vweird.f32 %v842_v23 }
 0x11e   :  { %v511_v25 = vshrl.u32 %v510_v24, 23  ;;  %v514_v32 = vand.u32 8388607, %v507_v28  ;;  %vm508_vm11 = vcmp.le.f32.partialorder %v507_v28, 0.7853982 }
 0x120   :  { %v629_v26 = vadd.s32 4294967169, %v511_v25  ;;  %v515_v50 = vor.u32 8388608, %v514_v32 }
 0x122   :  { %v517_v27 = vadd.s32 1, %v629_v26  ;;  %v555_v0 = vshll.u32 %v515_v50, 8 }
 0x124   :  { %vm518_vm3 = vcmp.gt.s32.totalorder %v517_v27, 0 }
 0x125   :  { %v519_v29 = vsel %vm518_vm3, %v517_v27, 0 }
 0x126   :  { %v521_v30 = vand.u32 31, %v519_v29  ;;  %v520_v33 = vshrl.u32 %v519_v29, 5 }
 0x128   :  { %v522_v31 = vsub.s32 32, %v521_v30  ;;  %v524_v35 = vshll.u32 %v779_v34, %v521_v30  ;;  %v527_v37 = vshll.u32 %v780_v36, %v521_v30  ;;  %v530_v41 = vshll.u32 %v781_v39, %v521_v30 }
 0x129   :  { %v533_v44 = vshll.u32 %v782_v42, %v521_v30  ;;  %v536_v47 = vshll.u32 %v783_v45, %v521_v30  ;;  %vm539_vm4 = vcmp.lt.s32.totalorder %v520_v33, 1  ;;  %vm542_vm5 = vcmp.lt.s32.totalorder %v520_v33, 4 }
 0x12a   :  { %v525_v38 = vshrl.u32 %v780_v36, %v522_v31  ;;  %v528_v40 = vshrl.u32 %v781_v39, %v522_v31  ;;  %v531_v43 = vshrl.u32 %v782_v42, %v522_v31  ;;  %v534_v46 = vshrl.u32 %v783_v45, %v522_v31 }
 0x12b   :  { %v537_v49 = vshrl.u32 %v784_v48, %v522_v31  ;;  %v523_v59 = vshrl.u32 %v779_v34, %v522_v31  ;;  %vm541_vm6 = vcmp.lt.s32.totalorder %v520_v33, 3  ;;  %vm540_vm7 = vcmp.lt.s32.totalorder %v520_v33, 2 }
 0x12c   :  { %v526_v51 = vor.u32 %v525_v38, %v524_v35  ;;  %v529_v52 = vor.u32 %v528_v40, %v527_v37  ;;  %v532_v53 = vor.u32 %v531_v43, %v530_v41  ;;  %v535_v54 = vor.u32 %v534_v46, %v533_v44 }
 0x12d   :  { %v538_v55 = vor.u32 %v537_v49, %v536_v47 }
 0x12e   :  { %v544_v56 = vsel %vm542_vm5, %v532_v53, 2102212464  ;;  %v547_v57 = vsel %vm539_vm4, %v526_v51, %v529_v52  ;;  %v551_v58 = vsel %vm539_vm4, %v529_v52, %v532_v53  ;;  %v548_v60 = vsel %vm542_vm5, %v535_v54, 920167782 }
 0x12f   :  { %v552_v61 = vsel %vm542_vm5, %v538_v55, 1326507024  ;;  %v549_v62 = vsel %vm541_vm6, %v532_v53, %v548_v60  ;;  %v543_v1 = vsel %vm539_vm4, %v523_v59, %v526_v51  ;;  %v545_v2 = vsel %vm541_vm6, %v529_v52, %v544_v56 }
 0x130   :  { %v553_v63 = vsel %vm541_vm6, %v535_v54, %v552_v61  ;;  %v550_v3 = vsel %vm540_vm7, %v547_v57, %v549_v62  ;;  %v546_v9 = vsel %vm540_vm7, %v543_v1, %v545_v2 }
 0x131   :  { %v554_v4 = vsel %vm540_vm7, %v551_v58, %v553_v63  ;;  %v851_v7 = vmul.u32.u64.low %v555_v0, %v550_v3  ;;  %v852_v8 = vmul.u32.u64.high %v555_v0, %v550_v3, %v851_v7  ;;  %v562_v11 = vmul.u32 %v555_v0, %v546_v9 }
 0x132   :  { %v848_v5 = vmul.u32.u64.low %v555_v0, %v554_v4  ;;  %v849_v6 = vmul.u32.u64.high %v555_v0, %v554_v4, %v848_v5 }
 0x133   :  { %v565_v10 = vadd.s32 1, %v852_v8 }
 0x134   :  { %vm564_vm8 = vc.u32 %v849_v6, %v851_v7  ;;  %v563_v24 = vadd.s32 %v851_v7, %v849_v6 }
 0x135   :  { %v566_v12 = vsel %vm564_vm8, %v565_v10, %v852_v8 }
 0x136   :  { %v567_v13 = vadd.s32 %v566_v12, %v562_v11 }
 0x138   :  { %v568_v14 = vadd.s32 536870912, %v567_v13 }
 0x13a   :  { %v569_v15 = vshrl.u32 %v568_v14, 30 }
 0x13c   :  { %v570_v16 = vshll.u32 %v569_v15, 30  ;;  %v593_v39 = vsub.s32 4, %v569_v15 }
 0x13e   :  { %v571_v17 = vsub.s32 %v567_v13, %v570_v16  ;;  %v594_v41 = vsel %vm509_vm10, %v593_v39, %v569_v15 }
 0x13f   :  { %v596_v42 = vsel %vm508_vm11, 0, %v594_v41 }
 0x140   :  { %v573_v18 = vsub.s32 0, %v571_v17  ;;  %v600_v43 = vand.u32 3, %v596_v42 }
 0x142   :  { %v630_v19 = vmin.u32 %v573_v18, %v571_v17  ;;  %vm605_vm12 = vcmp.eq.s32.totalorder %v600_v43, 2  ;;  %vm602_vm13 = vcmp.eq.s32.totalorder %v600_v43, 0  ;;  %vm601_vm14 = vcmp.lt.s32.totalorder %v600_v43, 2 }
 0x144   :  { %v575_v20 = vclz %v630_v19 }
 0x146   :  { %v631_v21 = vadd.s32 4294967294, %v575_v20 }
 0x148   :  { %vm632_vm9 = vcmp.lt.s32.totalorder %v631_v21, 0 }
 0x149   :  { %v578_v22 = vsel %vm632_vm9, 0, %v631_v21 }
 0x14a   :  { %v579_v25 = vsub.s32 32, %v578_v22  ;;  %v583_v26 = vsub.s32 4294967266, %v578_v22  ;;  %v580_v27 = vshll.u32 %v571_v17, %v578_v22 }
 0x14c   :  { %v581_v29 = vshrl.u32 %v563_v24, %v579_v25  ;;  %v584_v30 = vadd.s32 127, %v583_v26 }
 0x14e   :  { %v582_v31 = vor.u32 %v581_v29, %v580_v27  ;;  %v585_v32 = vshll.u32 %v584_v30, 23 }
 0x150   :  { %v586_v33 = vor.u32 4788187, %v585_v32  ;;  %v589_v35 = vcvt.s32.f32 %v582_v31 }
 0x152   :  { %v587_v34 = vand.u32 2147483647, %v586_v33 }
 0x154   :  { %v590_v36 = vmul.f32 %v589_v35, %v587_v34 }
 0x156   :  { %v591_v37 = vxor.u32 2147483648, %v590_v36 }
 0x158   :  { %v592_v38 = vsel %vm509_vm10, %v591_v37, %v590_v36 }
 0x159   :  { %v595_v40 = vsel %vm508_vm11, %v842_v23, %v592_v38 }
 0x15a   :  { %699 = vcosq.f32 %v595_v40 }
 0x15b   :  { %701 = vsinq.f32 %v595_v40 }
 0x164   :  { %v700_v44 = vpop.eup %699 }
 0x165   :  { %v702_v45 = vpop.eup %701  ;;  %v606_v46 = vxor.u32 2147483648, %v700_v44 }
 0x166   :  { %v603_v47 = vxor.u32 2147483648, %v702_v45 }
 0x167   :  { %v607_v48 = vsel %vm605_vm12, %v606_v46, %v702_v45 }
 0x168   :  { %v604_v28 = vsel %vm602_vm13, %v700_v44, %v603_v47 }
 0x169   :  { %v608_v49 = vsel %vm601_vm14, %v604_v28, %v607_v48 }
 0x16a   :  { %v609_v50 = vsel %vm599_vm15, nan, %v608_v49 }
 0x16b   :  { %610 = vst [vmem:[#allocation7] sm:$0x3] %v609_v50 }
 0x16c   :  { %758 = shalt.err (!%p755_p6)
}
 0x16d   :  { %s759_s15 = scalar_lea.hbm %s878_s3, 32 }
 0x16e   :  { %p760_p7 = scmp.ne.s32.totalorder %s878_s3, %s759_s15  ;;  %p763_p8 = scmp.lt.u32.totalorder %s759_s15, %s878_s3 }
 0x170   :  { %p765_p9 = pnand %p763_p8, %p760_p7 }
 0x172   :  { %768 = shalt.err (!%p765_p9)
}
 0x173   :  { %620 = dma.vmem_to_hbm [thread:$0]  %s618_s11, 32, %s878_s3, [#allocation4]  }
 0x174   :  { %773 = dma.done.wait [#allocation4], 32  }
 0x175   :  { %774 = vsyncadd [#allocation4], 4294967264 }
 0x176   :  { %624 = vsyncpa [#allocation3], 1 }
 0x177   :  { %625 = vsyncpa [#allocation6], 1 }
 0x178   :  { %626 = vsyncpa [#allocation4], 1 }

</bundles_post_ra>
